<compile_context>
chip_gen: v7x
topology: tpu7x:2x2x1
jax: 0.10.0
libtpu: 0.0.40
codegen_flags: <defaults>
</compile_context>

<pallas_src>
import jax
import jax.numpy as jnp
from jax.experimental import pallas as pl
from jax.experimental.pallas import tpu as pltpu


def _mirror_kernel(img_ref, rev_ref, out_ref):
    """img_ref: (row_tile, w_tile) tile read from the mirrored W-block position
       rev_ref: (w_tile, w_tile) f32 anti-diagonal permutation (lane reversal)
       out_ref: (row_tile, w_tile) lane-dense flipped tile, native dtype
    """
    x = img_ref[...].astype(jnp.float32)
    y = jnp.dot(x, rev_ref[...], preferred_element_type=jnp.float32)
    out_ref[...] = y.astype(out_ref.dtype)


def _reverse_permutation(w, dtype=jnp.float32):
    """(w, w) matrix with ones on the anti-diagonal: x @ Rev == flip(x, -1)."""
    row = jax.lax.broadcasted_iota(jnp.int32, (w, w), 0)
    col = jax.lax.broadcasted_iota(jnp.int32, (w, w), 1)
    return (row + col == w - 1).astype(dtype)


def _pick_row_tile(R, target=1024):
    """Largest multiple-of-8 divisor of R that is <= target (avoids any pad);
    falls back to `target` (Pallas masks the ragged last row block)."""
    if R <= target:
        return R
    for t in range(target, 7, -8):
        if R % t == 0:
            return t
    return target


def mirror_pallas(video, *, row_tile_target=1024):
    """Horizontal mirror of an NTCHW video tensor. Same shape & dtype out."""
    assert video.ndim == 5, "Expects Video Tensor in 5D (NTCHW)"
    N, T, C, H, W = video.shape
    assert C == 3, "Expects Video Tensor in 5D (NTCHW) with C == 3"

    dtype = video.dtype
    itemsize = jnp.dtype(dtype).itemsize

    R = N * T * C * H
    img = video.reshape(R, W)                      # free metadata reshape, native dtype

    # W tiling: 128-lane blocks when possible, otherwise a single full-W block.
    w_tile = 128 if (W % 128 == 0) else W
    nw = W // w_tile

    row_tile = _pick_row_tile(R, row_tile_target)
    nr = int(pl.cdiv(R, row_tile))

    # Small per-block reversal constant, built once in plain JAX (hoisted).
    rev = _reverse_permutation(w_tile, jnp.float32)

    # Memory-bound cost profile: 2*w_tile flops/element, native-dtype traffic.
    cost = pl.CostEstimate(
        flops=2 * R * W * w_tile,
        transcendentals=0,
        bytes_accessed=2 * R * W * itemsize + w_tile * w_tile * 4,
    )

    # Real footprint: double-buffered in/out tiles + rev + in-kernel f32 temps.
    tile_bytes = row_tile * w_tile * itemsize
    f32_tile_bytes = row_tile * w_tile * 4
    footprint = 2 * tile_bytes + 2 * tile_bytes + 2 * w_tile * w_tile * 4 \
        + 3 * f32_tile_bytes
    vmem_limit = int(min(48 * 1024 * 1024, max(16 * 1024 * 1024, 2 * footprint)))

    out = pl.pallas_call(
        _mirror_kernel,
        out_shape=jax.ShapeDtypeStruct((R, W), dtype),
        grid_spec=pltpu.PrefetchScalarGridSpec(
            num_scalar_prefetch=0,
            grid=(nr, nw),
            in_specs=[
                # Read the mirrored-position W block of the same row tile.
                pl.BlockSpec((row_tile, w_tile), lambda i, j: (i, nw - 1 - j)),
                # Resident (w_tile, w_tile) reversal constant (64 KiB at 128).
                pl.BlockSpec((w_tile, w_tile), lambda i, j: (0, 0)),
            ],
            out_specs=pl.BlockSpec((row_tile, w_tile), lambda i, j: (i, j)),
        ),
        compiler_params=pltpu.CompilerParams(
            dimension_semantics=("parallel", "parallel"),
            vmem_limit_bytes=vmem_limit,
        ),
        cost_estimate=cost,
    )(img, rev)

    return out.reshape(N, T, C, H, W)


# TODO(synk): the `str` video-path branch (decord VideoReader decode) and the
# list-of-tensors branch of the original module have no in-kernel equivalent;
# the list case can be handled by mapping `mirror_pallas` over the list.


if __name__ == "__main__":
    key = jax.random.PRNGKey(0)
    k1, k2 = jax.random.split(key)

    # Case 1: small f32 NTCHW video (W not a multiple of 128 -> single W block).
    N, T, C, H, W = 2, 4, 3, 16, 16
    video = jax.random.uniform(k1, (N, T, C, H, W), dtype=jnp.float32)
    out = mirror_pallas(video)
    jax.block_until_ready(out)
    ref = jnp.flip(video, axis=-1)
    assert out.shape == video.shape and out.dtype == video.dtype
    assert bool(jnp.array_equal(out, ref))

    # Case 2: bf16 video with W a multiple of 128 -> reversed-column-block path,
    # native (half-width) dtype I/O end-to-end.
    video2 = jax.random.uniform(k2, (1, 2, 3, 8, 256),
                                dtype=jnp.float32).astype(jnp.bfloat16)
    out2 = mirror_pallas(video2)
    jax.block_until_ready(out2)
    ref2 = jnp.flip(video2, axis=-1)
    assert out2.shape == video2.shape and out2.dtype == video2.dtype
    assert bool(jnp.array_equal(out2, ref2))

    print("KERNEL_OK")
</pallas_src>

<mosaic_0001>
module attributes {stable_mosaic.version = 11 : i64} {
  func.func @_mirror_kernel(%arg0: i32, %arg1: i32, %arg2: memref<384x16xf32, #tpu.memory_space<vmem>>, %arg3: memref<16x16xf32, #tpu.memory_space<vmem>>, %arg4: memref<384x16xf32, #tpu.memory_space<vmem>>) attributes {dimension_semantics = [#tpu.dimension_semantics<parallel>, #tpu.dimension_semantics<parallel>], iteration_bounds = array<i64: 1, 1>, scalar_prefetch = 0 : i64, scratch_operands = 0 : i64, tpu.core_type = #tpu.core_type<tc>, window_params = [{transform_indices = @transform_0, window_bounds = array<i64: 384, 16>}, {pipeline_mode = #tpu.pipeline_mode<synchronous>, transform_indices = @transform_1, window_bounds = array<i64: 16, 16>}, {transform_indices = @transform_2, window_bounds = array<i64: 384, 16>}]} {
    %c0 = arith.constant 0 : index
    %c0_0 = arith.constant 0 : index
    %0 = vector.load %arg2[%c0, %c0_0] : memref<384x16xf32, #tpu.memory_space<vmem>>, vector<384x16xf32>
    %c0_1 = arith.constant 0 : index
    %c0_2 = arith.constant 0 : index
    %1 = vector.load %arg3[%c0_1, %c0_2] : memref<16x16xf32, #tpu.memory_space<vmem>>, vector<16x16xf32>
    %cst = arith.constant dense<0.000000e+00> : vector<384x16xf32>
    %2 = tpu.matmul %0, %1, %cst {dimension_numbers = #tpu.dot_dimension_numbers<[1], [0], [0], [1], [0, 0, 1, 1], [], []>} : vector<384x16xf32>, vector<16x16xf32>, vector<384x16xf32> -> vector<384x16xf32>
    %c0_3 = arith.constant 0 : index
    %c0_4 = arith.constant 0 : index
    %3 = vector.load %arg4[%c0_3, %c0_4] : memref<384x16xf32, #tpu.memory_space<vmem>>, vector<384x16xf32>
    tpu.vector_store %arg4[%c0_3, %c0_4], %2 {strides = array<i32>} : memref<384x16xf32, #tpu.memory_space<vmem>>, vector<384x16xf32>,
    return
  }
  func.func @transform_0(%arg0: i32, %arg1: i32) -> (i32, i32) {
    %c0_i32 = arith.constant 0 : i32
    %0 = arith.subi %c0_i32, %arg1 : i32
    %c0_i32_0 = arith.constant 0 : i32
    return %arg0, %0 : i32, i32
  }
  func.func @transform_1(%arg0: i32, %arg1: i32) -> (i32, i32) {
    %c0_i32 = arith.constant 0 : i32
    %c0_i32_0 = arith.constant 0 : i32
    %c0_i32_1 = arith.constant 0 : i32
    return %c0_i32, %c0_i32_0 : i32, i32
  }
  func.func @transform_2(%arg0: i32, %arg1: i32) -> (i32, i32) {
    %c0_i32 = arith.constant 0 : i32
    return %arg0, %arg1 : i32, i32
  }
}

</mosaic_0001>

<bundles_post_ra>
// kernel: tpu_custom_call.1
= control target key start
LH: loop header
LB: loop body
LE: loop exit
PB: predicated region body
PF: predicated region fallthrough
CT: control target
= control target key end

     0   :  { %vm78_vm0 = vcmask 130048   ;;  %s1171_s1 = inlined_call_operand.vmem [shape: f32[16,16], index: 1, kind: input, shape index: {}]   ;;  %s1172_s0 = inlined_call_operand.vmem [shape: f32[384,16], index: 0, kind: input, shape index: {}]   ;;  %s1173_s2 = inlined_call_operand.vmem [shape: f32[384,16], index: 2, kind: output, shape index: {}]  }
   0x1   :  { %v76_v0 = vld [vmem:[%s1171_s1] sm:$0xff]  ;;  %v77_v1 = vld [vmem:[%s1171_s1 + $0x8] sm:$0xff]  ;;  %v30_v7 = vld [vmem:[%s1172_s0 + $0x10] sm:$0xff] }
   0x2   :  { %v28_v2 = vld [vmem:[%s1172_s0] sm:$0xff]  ;;  %v760_v3 = vpack.c.bf16 %v77_v1, %v76_v0  ;;  %v29_v5 = vld [vmem:[%s1172_s0 + $0x8] sm:$0xff]  ;;  %v54_v8 = vld [vmem:[%s1172_s0 + $0xd0] sm:$0xff] }
   0x3   :  { %688 = vmatprep.mubr.msk.f32.mxu0 %vm78_vm0, %v28_v2  ;;  %v52_v4 = vld [vmem:[%s1172_s0 + $0xc0] sm:$0xff]  ;;  %v53_v6 = vld [vmem:[%s1172_s0 + $0xc8] sm:$0xff]  ;;  %v31_v9 = vld [vmem:[%s1172_s0 + $0x18] sm:$0xff] }
   0x4   :  { %724 = vmatprep.mubr.msk.f32.mxu1 %vm78_vm0, %v52_v4  ;;  %761 = vmatprep.subr.bf16.mxu0 %v760_v3  ;;  %v55_v10 = vld [vmem:[%s1172_s0 + $0xd8] sm:$0xff]  ;;  %v32_v11 = vld [vmem:[%s1172_s0 + $0x20] sm:$0xff]  ;;  %v33_v13 = vld [vmem:[%s1172_s0 + $0x28] sm:$0xff] }
   0x5   :  { %764 = vmatprep.subr.bf16.mxu1 %v760_v3  ;;  %763 = vmatpush3.bf16.msra.mxu0 %v760_v3  ;;  %v56_v12 = vld [vmem:[%s1172_s0 + $0xe0] sm:$0xff]  ;;  %v57_v14 = vld [vmem:[%s1172_s0 + $0xe8] sm:$0xff]  ;;  %v34_v15 = vld [vmem:[%s1172_s0 + $0x30] sm:$0xff] }
   0x6   :  { %765 = vmatpush3.bf16.msra.mxu1 %v760_v3  ;;  %v58_v16 = vld [vmem:[%s1172_s0 + $0xf0] sm:$0xff]  ;;  %v35_v17 = vld [vmem:[%s1172_s0 + $0x38] sm:$0xff]  ;;  %v36_v19 = vld [vmem:[%s1172_s0 + $0x40] sm:$0xff] }
   0x7   :  { %v59_v18 = vld [vmem:[%s1172_s0 + $0xf8] sm:$0xff]  ;;  %v60_v20 = vld [vmem:[%s1172_s0 + $0x100] sm:$0xff]  ;;  %v37_v21 = vld [vmem:[%s1172_s0 + $0x48] sm:$0xff] }
   0x8   :  { %689 = vmatmul.mubr.msk.f32.vlgmr.msra.gmra.mrb[0].mxu0 %vm78_vm0, %v29_v5  ;;  %v61_v22 = vld [vmem:[%s1172_s0 + $0x108] sm:$0xff]  ;;  %v38_v23 = vld [vmem:[%s1172_s0 + $0x50] sm:$0xff]  ;;  %v39_v25 = vld [vmem:[%s1172_s0 + $0x58] sm:$0xff] }
   0x9   :  { %725 = vmatmul.mubr.msk.f32.vlgmr.msra.gmra.mrb[0].mxu1 %vm78_vm0, %v53_v6  ;;  %691 = vmatprep.mubr.msk.f32.mxu0 %vm78_vm0, %v30_v7  ;;  %v62_v24 = vld [vmem:[%s1172_s0 + $0x110] sm:$0xff]  ;;  %v63_v26 = vld [vmem:[%s1172_s0 + $0x118] sm:$0xff]  ;;  %v40_v27 = vld [vmem:[%s1172_s0 + $0x60] sm:$0xff] }
   0xa   :  { %727 = vmatprep.mubr.msk.f32.mxu1 %vm78_vm0, %v54_v8  ;;  %v64_v28 = vld [vmem:[%s1172_s0 + $0x120] sm:$0xff]  ;;  %v41_v29 = vld [vmem:[%s1172_s0 + $0x68] sm:$0xff]  ;;  %v42_v31 = vld [vmem:[%s1172_s0 + $0x70] sm:$0xff] }
   0xb   :  { %v65_v30 = vld [vmem:[%s1172_s0 + $0x128] sm:$0xff]  ;;  %v66_v32 = vld [vmem:[%s1172_s0 + $0x130] sm:$0xff]  ;;  %v43_v33 = vld [vmem:[%s1172_s0 + $0x78] sm:$0xff] }
   0xc   :  { %692 = vmatmul.mubr.msk.f32.gmra.mrb[2].mxu0 %vm78_vm0, %v31_v9  ;;  %v67_v34 = vld [vmem:[%s1172_s0 + $0x138] sm:$0xff]  ;;  %v44_v35 = vld [vmem:[%s1172_s0 + $0x80] sm:$0xff]  ;;  %v45_v37 = vld [vmem:[%s1172_s0 + $0x88] sm:$0xff] }
   0xd   :  { %728 = vmatmul.mubr.msk.f32.gmra.mrb[2].mxu1 %vm78_vm0, %v55_v10  ;;  %694 = vmatprep.mubr.msk.f32.mxu0 %vm78_vm0, %v32_v11  ;;  %v68_v36 = vld [vmem:[%s1172_s0 + $0x140] sm:$0xff]  ;;  %v69_v38 = vld [vmem:[%s1172_s0 + $0x148] sm:$0xff]  ;;  %v46_v39 = vld [vmem:[%s1172_s0 + $0x90] sm:$0xff] }
   0xe   :  { %730 = vmatprep.mubr.msk.f32.mxu1 %vm78_vm0, %v56_v12  ;;  %v70_v40 = vld [vmem:[%s1172_s0 + $0x150] sm:$0xff]  ;;  %v47_v41 = vld [vmem:[%s1172_s0 + $0x98] sm:$0xff]  ;;  %v48_v43 = vld [vmem:[%s1172_s0 + $0xa0] sm:$0xff] }
   0xf   :  { %v71_v42 = vld [vmem:[%s1172_s0 + $0x158] sm:$0xff]  ;;  %v72_v44 = vld [vmem:[%s1172_s0 + $0x160] sm:$0xff]  ;;  %v49_v45 = vld [vmem:[%s1172_s0 + $0xa8] sm:$0xff] }
  0x10   :  { %695 = vmatmul.mubr.msk.f32.gmra.mrb[4].mxu0 %vm78_vm0, %v33_v13  ;;  %v73_v46 = vld [vmem:[%s1172_s0 + $0x168] sm:$0xff]  ;;  %v50_v47 = vld [vmem:[%s1172_s0 + $0xb0] sm:$0xff]  ;;  %v51_v49 = vld [vmem:[%s1172_s0 + $0xb8] sm:$0xff] }
  0x11   :  { %731 = vmatmul.mubr.msk.f32.gmra.mrb[4].mxu1 %vm78_vm0, %v57_v14  ;;  %697 = vmatprep.mubr.msk.f32.mxu0 %vm78_vm0, %v34_v15  ;;  %v74_v48 = vld [vmem:[%s1172_s0 + $0x170] sm:$0xff]  ;;  %v75_v50 = vld [vmem:[%s1172_s0 + $0x178] sm:$0xff] }
  0x12   :  { %733 = vmatprep.mubr.msk.f32.mxu1 %vm78_vm0, %v58_v16 }
  0x14   :  { %698 = vmatmul.mubr.msk.f32.gmra.mrb[6].mxu0 %vm78_vm0, %v35_v17 }
  0x15   :  { %734 = vmatmul.mubr.msk.f32.gmra.mrb[6].mxu1 %vm78_vm0, %v59_v18  ;;  %700 = vmatprep.mubr.msk.f32.mxu0 %vm78_vm0, %v36_v19 }
  0x16   :  { %736 = vmatprep.mubr.msk.f32.mxu1 %vm78_vm0, %v60_v20 }
  0x18   :  { %701 = vmatmul.mubr.msk.f32.gmra.mrb[8].mxu0 %vm78_vm0, %v37_v21 }
  0x19   :  { %737 = vmatmul.mubr.msk.f32.gmra.mrb[8].mxu1 %vm78_vm0, %v61_v22  ;;  %703 = vmatprep.mubr.msk.f32.mxu0 %vm78_vm0, %v38_v23 }
  0x1a   :  { %739 = vmatprep.mubr.msk.f32.mxu1 %vm78_vm0, %v62_v24 }
  0x1c   :  { %704 = vmatmul.mubr.msk.f32.gmra.mrb[10].mxu0 %vm78_vm0, %v39_v25 }
  0x1d   :  { %740 = vmatmul.mubr.msk.f32.gmra.mrb[10].mxu1 %vm78_vm0, %v63_v26  ;;  %706 = vmatprep.mubr.msk.f32.mxu0 %vm78_vm0, %v40_v27 }
  0x1e   :  { %742 = vmatprep.mubr.msk.f32.mxu1 %vm78_vm0, %v64_v28 }
  0x20   :  { %707 = vmatmul.mubr.msk.f32.gmra.mrb[12].mxu0 %vm78_vm0, %v41_v29 }
  0x21   :  { %743 = vmatmul.mubr.msk.f32.gmra.mrb[12].mxu1 %vm78_vm0, %v65_v30  ;;  %709 = vmatprep.mubr.msk.f32.mxu0 %vm78_vm0, %v42_v31 }
  0x22   :  { %745 = vmatprep.mubr.msk.f32.mxu1 %vm78_vm0, %v66_v32 }
  0x24   :  { %710 = vmatmul.mubr.msk.f32.gmra.mrb[14].mxu0 %vm78_vm0, %v43_v33 }
  0x25   :  { %746 = vmatmul.mubr.msk.f32.gmra.mrb[14].mxu1 %vm78_vm0, %v67_v34  ;;  %712 = vmatprep.mubr.msk.f32.mxu0 %vm78_vm0, %v44_v35 }
  0x26   :  { %748 = vmatprep.mubr.msk.f32.mxu1 %vm78_vm0, %v68_v36 }
  0x28   :  { %713 = vmatmul.mubr.msk.f32.gmra.mrb[16].mxu0 %vm78_vm0, %v45_v37 }
  0x29   :  { %749 = vmatmul.mubr.msk.f32.gmra.mrb[16].mxu1 %vm78_vm0, %v69_v38  ;;  %715 = vmatprep.mubr.msk.f32.mxu0 %vm78_vm0, %v46_v39 }
  0x2a   :  { %751 = vmatprep.mubr.msk.f32.mxu1 %vm78_vm0, %v70_v40 }
  0x2c   :  { %716 = vmatmul.mubr.msk.f32.gmra.mrb[18].mxu0 %vm78_vm0, %v47_v41 }
  0x2d   :  { %752 = vmatmul.mubr.msk.f32.gmra.mrb[18].mxu1 %vm78_vm0, %v71_v42  ;;  %718 = vmatprep.mubr.msk.f32.mxu0 %vm78_vm0, %v48_v43 }
  0x2e   :  { %754 = vmatprep.mubr.msk.f32.mxu1 %vm78_vm0, %v72_v44 }
  0x30   :  { %719 = vmatmul.mubr.msk.f32.gmra.mrb[20].mxu0 %vm78_vm0, %v49_v45 }
  0x31   :  { %755 = vmatmul.mubr.msk.f32.gmra.mrb[20].mxu1 %vm78_vm0, %v73_v46  ;;  %721 = vmatprep.mubr.msk.f32.mxu0 %vm78_vm0, %v50_v47 }
  0x32   :  { %757 = vmatprep.mubr.msk.f32.mxu1 %vm78_vm0, %v74_v48 }
  0x34   :  { %722 = vmatmul.mubr.msk.f32.gmra.mrb[22].mxu0 %vm78_vm0, %v51_v49 }
  0x35   :  { %758 = vmatmul.mubr.msk.f32.gmra.mrb[22].mxu1 %vm78_vm0, %v75_v50 }
  0xdb   :  { %v690_v51 = vpop.f32.mrb[0].mxu0 }
  0xdc   :  { %v726_v52 = vpop.f32.mrb[0].mxu1  ;;  %529 = vst.msk [vmem:[%s1173_s2 + $0x8] sm:$0xff] %vm78_vm0, %v690_v51  ;;  %v289_v53 = vpop.f32.mrb[1].mxu0 }
  0xdd   :  { %553 = vst.msk [vmem:[%s1173_s2 + $0xc8] sm:$0xff] %vm78_vm0, %v726_v52  ;;  %v409_v54 = vpop.f32.mrb[1].mxu1  ;;  %528 = vst.msk [vmem:[%s1173_s2] sm:$0xff] %vm78_vm0, %v289_v53 }
  0xde   :  { %552 = vst.msk [vmem:[%s1173_s2 + $0xc0] sm:$0xff] %vm78_vm0, %v409_v54 }
  0xdf   :  { %v693_v55 = vpop.f32.mrb[2].mxu0 }
  0xe0   :  { %v729_v56 = vpop.f32.mrb[2].mxu1  ;;  %531 = vst.msk [vmem:[%s1173_s2 + $0x18] sm:$0xff] %vm78_vm0, %v693_v55  ;;  %v299_v57 = vpop.f32.mrb[3].mxu0 }
  0xe1   :  { %555 = vst.msk [vmem:[%s1173_s2 + $0xd8] sm:$0xff] %vm78_vm0, %v729_v56  ;;  %v419_v58 = vpop.f32.mrb[3].mxu1  ;;  %530 = vst.msk [vmem:[%s1173_s2 + $0x10] sm:$0xff] %vm78_vm0, %v299_v57 }
  0xe2   :  { %554 = vst.msk [vmem:[%s1173_s2 + $0xd0] sm:$0xff] %vm78_vm0, %v419_v58 }
  0xe3   :  { %v696_v59 = vpop.f32.mrb[4].mxu0 }
  0xe4   :  { %v732_v60 = vpop.f32.mrb[4].mxu1  ;;  %533 = vst.msk [vmem:[%s1173_s2 + $0x28] sm:$0xff] %vm78_vm0, %v696_v59  ;;  %v309_v61 = vpop.f32.mrb[5].mxu0 }
  0xe5   :  { %557 = vst.msk [vmem:[%s1173_s2 + $0xe8] sm:$0xff] %vm78_vm0, %v732_v60  ;;  %v429_v62 = vpop.f32.mrb[5].mxu1  ;;  %532 = vst.msk [vmem:[%s1173_s2 + $0x20] sm:$0xff] %vm78_vm0, %v309_v61 }
  0xe6   :  { %556 = vst.msk [vmem:[%s1173_s2 + $0xe0] sm:$0xff] %vm78_vm0, %v429_v62 }
  0xe7   :  { %v699_v63 = vpop.f32.mrb[6].mxu0 }
  0xe8   :  { %v735_v0 = vpop.f32.mrb[6].mxu1  ;;  %535 = vst.msk [vmem:[%s1173_s2 + $0x38] sm:$0xff] %vm78_vm0, %v699_v63  ;;  %v319_v1 = vpop.f32.mrb[7].mxu0 }
  0xe9   :  { %559 = vst.msk [vmem:[%s1173_s2 + $0xf8] sm:$0xff] %vm78_vm0, %v735_v0  ;;  %v439_v2 = vpop.f32.mrb[7].mxu1  ;;  %534 = vst.msk [vmem:[%s1173_s2 + $0x30] sm:$0xff] %vm78_vm0, %v319_v1 }
  0xea   :  { %558 = vst.msk [vmem:[%s1173_s2 + $0xf0] sm:$0xff] %vm78_vm0, %v439_v2 }
  0xeb   :  { %v702_v3 = vpop.f32.mrb[8].mxu0 }
  0xec   :  { %v738_v4 = vpop.f32.mrb[8].mxu1  ;;  %537 = vst.msk [vmem:[%s1173_s2 + $0x48] sm:$0xff] %vm78_vm0, %v702_v3  ;;  %v329_v5 = vpop.f32.mrb[9].mxu0 }
  0xed   :  { %561 = vst.msk [vmem:[%s1173_s2 + $0x108] sm:$0xff] %vm78_vm0, %v738_v4  ;;  %v449_v6 = vpop.f32.mrb[9].mxu1  ;;  %536 = vst.msk [vmem:[%s1173_s2 + $0x40] sm:$0xff] %vm78_vm0, %v329_v5 }
  0xee   :  { %560 = vst.msk [vmem:[%s1173_s2 + $0x100] sm:$0xff] %vm78_vm0, %v449_v6 }
  0xef   :  { %v705_v7 = vpop.f32.mrb[10].mxu0 }
  0xf0   :  { %v741_v8 = vpop.f32.mrb[10].mxu1  ;;  %539 = vst.msk [vmem:[%s1173_s2 + $0x58] sm:$0xff] %vm78_vm0, %v705_v7  ;;  %v339_v9 = vpop.f32.mrb[11].mxu0 }
  0xf1   :  { %563 = vst.msk [vmem:[%s1173_s2 + $0x118] sm:$0xff] %vm78_vm0, %v741_v8  ;;  %v459_v10 = vpop.f32.mrb[11].mxu1  ;;  %538 = vst.msk [vmem:[%s1173_s2 + $0x50] sm:$0xff] %vm78_vm0, %v339_v9 }
  0xf2   :  { %562 = vst.msk [vmem:[%s1173_s2 + $0x110] sm:$0xff] %vm78_vm0, %v459_v10 }
  0xf3   :  { %v708_v11 = vpop.f32.mrb[12].mxu0 }
  0xf4   :  { %v744_v12 = vpop.f32.mrb[12].mxu1  ;;  %541 = vst.msk [vmem:[%s1173_s2 + $0x68] sm:$0xff] %vm78_vm0, %v708_v11  ;;  %v349_v13 = vpop.f32.mrb[13].mxu0 }
  0xf5   :  { %565 = vst.msk [vmem:[%s1173_s2 + $0x128] sm:$0xff] %vm78_vm0, %v744_v12  ;;  %v469_v14 = vpop.f32.mrb[13].mxu1  ;;  %540 = vst.msk [vmem:[%s1173_s2 + $0x60] sm:$0xff] %vm78_vm0, %v349_v13 }
  0xf6   :  { %564 = vst.msk [vmem:[%s1173_s2 + $0x120] sm:$0xff] %vm78_vm0, %v469_v14 }
  0xf7   :  { %v711_v15 = vpop.f32.mrb[14].mxu0 }
  0xf8   :  { %v747_v16 = vpop.f32.mrb[14].mxu1  ;;  %543 = vst.msk [vmem:[%s1173_s2 + $0x78] sm:$0xff] %vm78_vm0, %v711_v15  ;;  %v359_v17 = vpop.f32.mrb[15].mxu0 }
  0xf9   :  { %567 = vst.msk [vmem:[%s1173_s2 + $0x138] sm:$0xff] %vm78_vm0, %v747_v16  ;;  %v479_v18 = vpop.f32.mrb[15].mxu1  ;;  %542 = vst.msk [vmem:[%s1173_s2 + $0x70] sm:$0xff] %vm78_vm0, %v359_v17 }
  0xfa   :  { %566 = vst.msk [vmem:[%s1173_s2 + $0x130] sm:$0xff] %vm78_vm0, %v479_v18 }
  0xfb   :  { %v714_v19 = vpop.f32.mrb[16].mxu0 }
  0xfc   :  { %v750_v20 = vpop.f32.mrb[16].mxu1  ;;  %545 = vst.msk [vmem:[%s1173_s2 + $0x88] sm:$0xff] %vm78_vm0, %v714_v19  ;;  %v369_v21 = vpop.f32.mrb[17].mxu0 }
  0xfd   :  { %569 = vst.msk [vmem:[%s1173_s2 + $0x148] sm:$0xff] %vm78_vm0, %v750_v20  ;;  %v489_v22 = vpop.f32.mrb[17].mxu1  ;;  %544 = vst.msk [vmem:[%s1173_s2 + $0x80] sm:$0xff] %vm78_vm0, %v369_v21 }
  0xfe   :  { %568 = vst.msk [vmem:[%s1173_s2 + $0x140] sm:$0xff] %vm78_vm0, %v489_v22 }
  0xff   :  { %v717_v23 = vpop.f32.mrb[18].mxu0 }
 0x100   :  { %v753_v24 = vpop.f32.mrb[18].mxu1  ;;  %547 = vst.msk [vmem:[%s1173_s2 + $0x98] sm:$0xff] %vm78_vm0, %v717_v23  ;;  %v379_v25 = vpop.f32.mrb[19].mxu0 }
 0x101   :  { %571 = vst.msk [vmem:[%s1173_s2 + $0x158] sm:$0xff] %vm78_vm0, %v753_v24  ;;  %v499_v26 = vpop.f32.mrb[19].mxu1  ;;  %546 = vst.msk [vmem:[%s1173_s2 + $0x90] sm:$0xff] %vm78_vm0, %v379_v25 }
 0x102   :  { %570 = vst.msk [vmem:[%s1173_s2 + $0x150] sm:$0xff] %vm78_vm0, %v499_v26 }
 0x103   :  { %v720_v27 = vpop.f32.mrb[20].mxu0 }
 0x104   :  { %v756_v28 = vpop.f32.mrb[20].mxu1  ;;  %549 = vst.msk [vmem:[%s1173_s2 + $0xa8] sm:$0xff] %vm78_vm0, %v720_v27  ;;  %v389_v29 = vpop.f32.mrb[21].mxu0 }
 0x105   :  { %573 = vst.msk [vmem:[%s1173_s2 + $0x168] sm:$0xff] %vm78_vm0, %v756_v28  ;;  %v509_v30 = vpop.f32.mrb[21].mxu1  ;;  %548 = vst.msk [vmem:[%s1173_s2 + $0xa0] sm:$0xff] %vm78_vm0, %v389_v29 }
 0x106   :  { %572 = vst.msk [vmem:[%s1173_s2 + $0x160] sm:$0xff] %vm78_vm0, %v509_v30 }
 0x107   :  { %v723_v31 = vpop.f32.mrb[22].mxu0 }
 0x108   :  { %v759_v32 = vpop.f32.mrb[22].mxu1  ;;  %551 = vst.msk [vmem:[%s1173_s2 + $0xb8] sm:$0xff] %vm78_vm0, %v723_v31  ;;  %v399_v33 = vpop.f32.mrb[23].mxu0 }
 0x109   :  { %575 = vst.msk [vmem:[%s1173_s2 + $0x178] sm:$0xff] %vm78_vm0, %v759_v32  ;;  %v519_v34 = vpop.f32.mrb[23].mxu1  ;;  %550 = vst.msk [vmem:[%s1173_s2 + $0xb0] sm:$0xff] %vm78_vm0, %v399_v33 }
 0x10a   :  { %574 = vst.msk [vmem:[%s1173_s2 + $0x170] sm:$0xff] %vm78_vm0, %v519_v34 }

</bundles_post_ra>
